<compile_context>
chip_gen: v6e
topology: v6e:2x2x1
jax: 0.10.0
libtpu: 0.0.40
codegen_flags: <defaults>
</compile_context>

<pallas_src>
import math
from functools import partial

import jax
import jax.numpy as jnp
from jax.experimental import pallas as pl
from jax.experimental.pallas import tpu as pltpu

LN_EPS = 1e-12  # LayerNorm(nout, eps=1e-12) in the reference module


# ------------------------------ Pallas kernel --------------------------------

def pitch_predictor_kernel(x_ref, pos_ref,
                           w0_ref, b0_ref, g0_ref, be0_ref,
                           wr_ref, br_ref, gr_ref, ber_ref,
                           lw_ref, lb_ref,
                           o_ref, *, kernel_size, n_layers):
    """Whole PitchPredictor forward for one batch element (grid axis = batch)."""
    K = kernel_size
    pad = (K - 1) // 2

    def conv_relu_ln(h, w2_bf16, bias, gamma, beta):
        # h: [T, Cin] f32 ; w2_bf16: [K*Cin, Cout] bf16 (im2col layout)
        T, Cin = h.shape
        zeros = jnp.zeros((pad, Cin), jnp.float32)
        hp = jnp.concatenate([zeros, h, zeros], axis=0)              # [T+K-1, Cin]
        # im2col: K shifted copies concatenated along lanes -> deep contraction
        cols = jnp.concatenate([hp[kk:kk + T] for kk in range(K)], axis=-1)  # [T, K*Cin]
        y = jnp.dot(cols.astype(jnp.bfloat16), w2_bf16,
                    preferred_element_type=jnp.float32) + bias       # [T, Cout] f32
        y = jnp.maximum(y, 0.0)                                      # ReLU
        # LayerNorm over channels (PyTorch LayerNorm(n_chans, dim=1)), eps=1e-12
        mu = jnp.mean(y, axis=-1, keepdims=True)
        var = jnp.mean(jnp.square(y - mu), axis=-1, keepdims=True)
        return (y - mu) * jax.lax.rsqrt(var + LN_EPS) * gamma + beta

    # add (alpha-scaled) positional embedding inside the kernel
    x = x_ref[0] + pos_ref[0]                                        # [T, idim]

    # layer 0 (idim -> n_chans), then the remaining stacked layers (n_chans -> n_chans)
    h = conv_relu_ln(x, w0_ref[...], b0_ref[...], g0_ref[...], be0_ref[...])
    for l in range(n_layers - 1):                                    # small & static
        h = conv_relu_ln(h, wr_ref[l], br_ref[l], gr_ref[l], ber_ref[l])

    # final Linear(n_chans -> odim)
    out = jnp.dot(h.astype(jnp.bfloat16), lw_ref[...],
                  preferred_element_type=jnp.float32) + lb_ref[...]  # [T, odim]
    o_ref[0] = out
    # TODO(synk): for very long T, tile the time axis with a (K-1)//2 halo
    # instead of holding the whole sequence per batch element in VMEM.


# ------------------- glue: sinusoidal positional embedding -------------------

def sinusoidal_table(num_embeddings, dim, padding_idx=0):
    half = dim // 2
    emb = math.log(10000.0) / (half - 1)
    emb = jnp.exp(jnp.arange(half, dtype=jnp.float32) * -emb)
    emb = jnp.arange(num_embeddings, dtype=jnp.float32)[:, None] * emb[None, :]
    emb = jnp.concatenate([jnp.sin(emb), jnp.cos(emb)], axis=1)
    if dim % 2 == 1:
        emb = jnp.concatenate([emb, jnp.zeros((num_embeddings, 1), jnp.float32)], axis=1)
    emb = emb.at[padding_idx].set(0.0)
    return emb


def make_positions(t, padding_idx):
    mask = (t != padding_idx)
    return jnp.cumsum(mask.astype(jnp.int32), axis=1) * mask.astype(jnp.int32) + padding_idx


# --------------------------------- wrapper -----------------------------------

def pitch_predictor_forward(xs, params, *, kernel_size, n_layers):
    """PitchPredictor.forward (eval mode). xs: [B, T, idim] -> [B, T, odim]."""
    assert n_layers >= 2
    B, T, idim = xs.shape
    C = params['g_rest'].shape[-1]
    odim = params['lin_w'].shape[-1]

    # positional embedding (table gather as host-side glue, gather is data-dependent)
    table = sinusoidal_table(T + 2, idim, padding_idx=0)
    positions = make_positions(xs[..., 0], 0)                             # [B, T] int
    pos_emb = (params['pos_embed_alpha'] * table[positions]).astype(jnp.float32)
    # TODO(synk): F.dropout in the conv blocks is identity here (eval mode).

    inputs = [xs.astype(jnp.float32), pos_emb,
              params['w0'], params['b0'], params['g0'], params['be0'],
              params['w_rest'], params['b_rest'], params['g_rest'], params['be_rest'],
              params['lin_w'], params['lin_b']]

    def full_spec(a):  # whole-array block, constant across the batch grid
        if a.ndim == 2:
            return pl.BlockSpec(a.shape, lambda b: (0, 0))
        return pl.BlockSpec(a.shape, lambda b: (0, 0, 0))

    in_specs = [
        pl.BlockSpec((1, T, idim), lambda b: (b, 0, 0)),   # x
        pl.BlockSpec((1, T, idim), lambda b: (b, 0, 0)),   # pos_emb
    ] + [full_spec(a) for a in inputs[2:]]
    out_specs = pl.BlockSpec((1, T, odim), lambda b: (b, 0, 0))

    # scoped-VMEM budget: double-buffered activation blocks + resident weights
    # + im2col / layer intermediates, clamped below v7x physical VMEM.
    def nbytes(a):
        return int(a.size) * a.dtype.itemsize
    est = 2 * (2 * T * idim * 4 + T * odim * 4)                       # x/pos/out blocks
    est += 2 * sum(nbytes(a) for a in inputs[2:])                     # weights (dbl-buf)
    est += T * kernel_size * max(idim, C) * 2 + 8 * T * max(idim, C) * 4
    vmem_limit = int(min(max(est + (4 << 20), 8 << 20), 56 << 20))

    kernel = partial(pitch_predictor_kernel, kernel_size=kernel_size, n_layers=n_layers)
    return pl.pallas_call(
        kernel,
        out_shape=jax.ShapeDtypeStruct((B, T, odim), jnp.float32),
        grid_spec=pltpu.PrefetchScalarGridSpec(
            num_scalar_prefetch=0,
            grid=(B,),
            in_specs=in_specs,
            out_specs=out_specs,
        ),
        compiler_params=pltpu.CompilerParams(
            dimension_semantics=("parallel",),
            vmem_limit_bytes=vmem_limit,
        ),
    )(*inputs)


# --------------------------------- params ------------------------------------

def init_params(key, idim, n_chans, odim, kernel_size, n_layers):
    C, K = n_chans, kernel_size
    keys = jax.random.split(key, 2 * n_layers + 2)

    def conv_im2col(k, cin):
        # PyTorch Conv1d weight [C_out, C_in, K] -> im2col layout [K*C_in, C_out]
        w = jax.random.normal(k, (C, cin, K), jnp.float32) / math.sqrt(cin * K)
        return jnp.transpose(w, (2, 1, 0)).reshape(K * cin, C)

    w0 = conv_im2col(keys[0], idim)
    b0 = (jax.random.normal(keys[1], (C,), jnp.float32) * 0.01).reshape(1, C)
    w_rest = jnp.stack([conv_im2col(keys[2 + 2 * i], C) for i in range(n_layers - 1)])
    b_rest = jnp.stack([(jax.random.normal(keys[3 + 2 * i], (C,), jnp.float32) * 0.01
                         ).reshape(1, C) for i in range(n_layers - 1)])
    lin_w = jax.random.normal(keys[-2], (odim, C), jnp.float32) / math.sqrt(C)
    lin_b = (jax.random.normal(keys[-1], (odim,), jnp.float32) * 0.01).reshape(1, odim)

    return dict(
        pos_embed_alpha=jnp.float32(1.0),
        w0=w0.astype(jnp.bfloat16), b0=b0,
        g0=jnp.ones((1, C), jnp.float32), be0=jnp.zeros((1, C), jnp.float32),
        w_rest=w_rest.astype(jnp.bfloat16), b_rest=b_rest,
        g_rest=jnp.ones((n_layers - 1, 1, C), jnp.float32),
        be_rest=jnp.zeros((n_layers - 1, 1, C), jnp.float32),
        lin_w=jnp.transpose(lin_w).astype(jnp.bfloat16), lin_b=lin_b,
    )


# --------------------------- pure-JAX reference ------------------------------

def reference_forward(xs, params, *, kernel_size, n_layers):
    """Same math in plain jnp (same bf16 weight usage) for a sanity check."""
    B, T, idim = xs.shape
    K = kernel_size
    pad = (K - 1) // 2
    table = sinusoidal_table(T + 2, idim, 0)
    pos = make_positions(xs[..., 0], 0)
    h = xs + params['pos_embed_alpha'] * table[pos]

    def layer(h, w2, b, g, be):
        _, T_, _ = h.shape
        hp = jnp.pad(h, ((0, 0), (pad, pad), (0, 0)))
        cols = jnp.concatenate([hp[:, kk:kk + T_] for kk in range(K)], axis=-1)
        y = jnp.einsum('btc,cd->btd', cols.astype(jnp.bfloat16), w2,
                       preferred_element_type=jnp.float32) + b
        y = jnp.maximum(y, 0.0)
        mu = jnp.mean(y, -1, keepdims=True)
        var = jnp.mean(jnp.square(y - mu), -1, keepdims=True)
        return (y - mu) * jax.lax.rsqrt(var + LN_EPS) * g + be

    h = layer(h, params['w0'], params['b0'], params['g0'], params['be0'])
    for l in range(n_layers - 1):
        h = layer(h, params['w_rest'][l], params['b_rest'][l],
                  params['g_rest'][l], params['be_rest'][l])
    return jnp.einsum('btc,cd->btd', h.astype(jnp.bfloat16), params['lin_w'],
                      preferred_element_type=jnp.float32) + params['lin_b']


# ----------------------------------- main -------------------------------------

if __name__ == "__main__":
    B, T, idim = 2, 16, 32
    n_chans, odim, n_layers, kernel_size = 32, 2, 3, 5

    key = jax.random.PRNGKey(0)
    kx, kp = jax.random.split(key)
    xs = jax.random.normal(kx, (B, T, idim), jnp.float32)
    xs = xs.at[1, 12:, :].set(0.0)   # padded tail -> positions fall back to padding_idx

    params = init_params(kp, idim, n_chans, odim, kernel_size, n_layers)

    out = pitch_predictor_forward(xs, params, kernel_size=kernel_size, n_layers=n_layers)
    out = jax.block_until_ready(out)

    ref = reference_forward(xs, params, kernel_size=kernel_size, n_layers=n_layers)

    assert out.shape == (B, T, odim)
    assert bool(jnp.all(jnp.isfinite(out)))
    assert float(jnp.max(jnp.abs(out - ref))) < 5e-2
    print("KERNEL_OK")
</pallas_src>

<mosaic_0001>
module attributes {stable_mosaic.version = 11 : i64} {
  func.func @pitch_predictor_kernel(%arg0: i32, %arg1: memref<1x16x32xf32, #tpu.memory_space<vmem>>, %arg2: memref<1x16x32xf32, #tpu.memory_space<vmem>>, %arg3: memref<160x32xbf16, #tpu.memory_space<vmem>>, %arg4: memref<1x32xf32, #tpu.memory_space<vmem>>, %arg5: memref<1x32xf32, #tpu.memory_space<vmem>>, %arg6: memref<1x32xf32, #tpu.memory_space<vmem>>, %arg7: memref<2x160x32xbf16, #tpu.memory_space<vmem>>, %arg8: memref<2x1x32xf32, #tpu.memory_space<vmem>>, %arg9: memref<2x1x32xf32, #tpu.memory_space<vmem>>, %arg10: memref<2x1x32xf32, #tpu.memory_space<vmem>>, %arg11: memref<32x2xbf16, #tpu.memory_space<vmem>>, %arg12: memref<1x2xf32, #tpu.memory_space<vmem>>, %arg13: memref<1x16x2xf32, #tpu.memory_space<vmem>>) attributes {dimension_semantics = [#tpu.dimension_semantics<parallel>], iteration_bounds = array<i64: 2>, scalar_prefetch = 0 : i64, scratch_operands = 0 : i64, tpu.core_type = #tpu.core_type<tc>, window_params = [{transform_indices = @transform_0, window_bounds = array<i64: 1, 16, 32>}, {transform_indices = @transform_1, window_bounds = array<i64: 1, 16, 32>}, {pipeline_mode = #tpu.pipeline_mode<synchronous>, transform_indices = @transform_2, window_bounds = array<i64: 160, 32>}, {pipeline_mode = #tpu.pipeline_mode<synchronous>, transform_indices = @transform_3, window_bounds = array<i64: 1, 32>}, {pipeline_mode = #tpu.pipeline_mode<synchronous>, transform_indices = @transform_4, window_bounds = array<i64: 1, 32>}, {pipeline_mode = #tpu.pipeline_mode<synchronous>, transform_indices = @transform_5, window_bounds = array<i64: 1, 32>}, {pipeline_mode = #tpu.pipeline_mode<synchronous>, transform_indices = @transform_6, window_bounds = array<i64: 2, 160, 32>}, {pipeline_mode = #tpu.pipeline_mode<synchronous>, transform_indices = @transform_7, window_bounds = array<i64: 2, 1, 32>}, {pipeline_mode = #tpu.pipeline_mode<synchronous>, transform_indices = @transform_8, window_bounds = array<i64: 2, 1, 32>}, {pipeline_mode = #tpu.pipeline_mode<synchronous>, transform_indices = @transform_9, window_bounds = array<i64: 2, 1, 32>}, {pipeline_mode = #tpu.pipeline_mode<synchronous>, transform_indices = @transform_10, window_bounds = array<i64: 32, 2>}, {pipeline_mode = #tpu.pipeline_mode<synchronous>, transform_indices = @transform_11, window_bounds = array<i64: 1, 2>}, {transform_indices = @transform_12, window_bounds = array<i64: 1, 16, 2>}]} {
    %c0 = arith.constant 0 : index
    %c0_0 = arith.constant 0 : index
    %c0_1 = arith.constant 0 : index
    %0 = vector.load %arg1[%c0, %c0_0, %c0_1] : memref<1x16x32xf32, #tpu.memory_space<vmem>>, vector<1x16x32xf32>
    %1 = vector.shape_cast %0 : vector<1x16x32xf32> to vector<16x32xf32>
    %c0_2 = arith.constant 0 : index
    %c0_3 = arith.constant 0 : index
    %c0_4 = arith.constant 0 : index
    %2 = vector.load %arg2[%c0_2, %c0_3, %c0_4] : memref<1x16x32xf32, #tpu.memory_space<vmem>>, vector<1x16x32xf32>
    %3 = vector.shape_cast %2 : vector<1x16x32xf32> to vector<16x32xf32>
    %4 = arith.addf %1, %3 : vector<16x32xf32>
    %c0_5 = arith.constant 0 : index
    %c0_6 = arith.constant 0 : index
    %5 = vector.load %arg3[%c0_5, %c0_6] : memref<160x32xbf16, #tpu.memory_space<vmem>>, vector<160x32xbf16>
    %c0_7 = arith.constant 0 : index
    %c0_8 = arith.constant 0 : index
    %6 = vector.load %arg4[%c0_7, %c0_8] : memref<1x32xf32, #tpu.memory_space<vmem>>, vector<1x32xf32>
    %c0_9 = arith.constant 0 : index
    %c0_10 = arith.constant 0 : index
    %7 = vector.load %arg5[%c0_9, %c0_10] : memref<1x32xf32, #tpu.memory_space<vmem>>, vector<1x32xf32>
    %c0_11 = arith.constant 0 : index
    %c0_12 = arith.constant 0 : index
    %8 = vector.load %arg6[%c0_11, %c0_12] : memref<1x32xf32, #tpu.memory_space<vmem>>, vector<1x32xf32>
    %cst = arith.constant 0.000000e+00 : f32
    %9 = vector.broadcast %cst : f32 to vector<2x32xf32>
    %10 = tpu.concatenate %9, %4, %9 in 0 : vector<2x32xf32>, vector<16x32xf32>, vector<2x32xf32> -> vector<20x32xf32>
    %11 = vector.extract_strided_slice %10 {offsets = [0, 0], sizes = [16, 32], strides = [1, 1]} : vector<20x32xf32> to vector<16x32xf32>
    %12 = vector.extract_strided_slice %10 {offsets = [1, 0], sizes = [16, 32], strides = [1, 1]} : vector<20x32xf32> to vector<16x32xf32>
    %13 = vector.extract_strided_slice %10 {offsets = [2, 0], sizes = [16, 32], strides = [1, 1]} : vector<20x32xf32> to vector<16x32xf32>
    %14 = vector.extract_strided_slice %10 {offsets = [3, 0], sizes = [16, 32], strides = [1, 1]} : vector<20x32xf32> to vector<16x32xf32>
    %15 = vector.extract_strided_slice %10 {offsets = [4, 0], sizes = [16, 32], strides = [1, 1]} : vector<20x32xf32> to vector<16x32xf32>
    %16 = tpu.concatenate %11, %12, %13, %14, %15 in 1 : vector<16x32xf32>, vector<16x32xf32>, vector<16x32xf32>, vector<16x32xf32>, vector<16x32xf32> -> vector<16x160xf32>
    %17 = arith.truncf %16 : vector<16x160xf32> to vector<16x160xbf16>
    %cst_13 = arith.constant dense<0.000000e+00> : vector<16x32xf32>
    %18 = tpu.matmul %17, %5, %cst_13 {dimension_numbers = #tpu.dot_dimension_numbers<[1], [0], [0], [1], [0, 0, 1, 1], [], []>} : vector<16x160xbf16>, vector<160x32xbf16>, vector<16x32xf32> -> vector<16x32xf32>
    %19 = vector.broadcast %6 : vector<1x32xf32> to vector<16x32xf32>
    %20 = arith.addf %18, %19 : vector<16x32xf32>
    %cst_14 = arith.constant 0.000000e+00 : f32
    %21 = vector.broadcast %cst_14 : f32 to vector<16x32xf32>
    %22 = arith.maximumf %20, %21 : vector<16x32xf32>
    %cst_15 = arith.constant dense<0.000000e+00> : vector<16xf32>
    %23 = vector.multi_reduction <add>, %22, %cst_15 [1] : vector<16x32xf32> to vector<16xf32>
    %24 = vector.shape_cast %23 : vector<16xf32> to vector<16x1xf32>
    %cst_16 = arith.constant 3.200000e+01 : f32
    %25 = vector.broadcast %cst_16 : f32 to vector<16x1xf32>
    %26 = arith.divf %24, %25 : vector<16x1xf32>
    %27 = vector.broadcast %26 : vector<16x1xf32> to vector<16x32xf32>
    %28 = arith.subf %22, %27 : vector<16x32xf32>
    %29 = arith.mulf %28, %28 : vector<16x32xf32>
    %cst_17 = arith.constant dense<0.000000e+00> : vector<16xf32>
    %30 = vector.multi_reduction <add>, %29, %cst_17 [1] : vector<16x32xf32> to vector<16xf32>
    %31 = vector.shape_cast %30 : vector<16xf32> to vector<16x1xf32>
    %cst_18 = arith.constant 3.200000e+01 : f32
    %32 = vector.broadcast %cst_18 : f32 to vector<16x1xf32>
    %33 = arith.divf %31, %32 : vector<16x1xf32>
    %34 = vector.broadcast %26 : vector<16x1xf32> to vector<16x32xf32>
    %35 = arith.subf %22, %34 : vector<16x32xf32>
    %cst_19 = arith.constant 9.99999996E-13 : f32
    %36 = vector.broadcast %cst_19 : f32 to vector<16x1xf32>
    %37 = arith.addf %33, %36 : vector<16x1xf32>
    %38 = math.rsqrt %37 : vector<16x1xf32>
    %39 = vector.broadcast %38 : vector<16x1xf32> to vector<16x32xf32>
    %40 = arith.mulf %35, %39 : vector<16x32xf32>
    %41 = vector.broadcast %7 : vector<1x32xf32> to vector<16x32xf32>
    %42 = arith.mulf %40, %41 : vector<16x32xf32>
    %43 = vector.broadcast %8 : vector<1x32xf32> to vector<16x32xf32>
    %44 = arith.addf %42, %43 : vector<16x32xf32>
    %c0_20 = arith.constant 0 : index
    %c0_21 = arith.constant 0 : index
    %c0_22 = arith.constant 0 : index
    %45 = vector.load %arg7[%c0_20, %c0_21, %c0_22] : memref<2x160x32xbf16, #tpu.memory_space<vmem>>, vector<1x160x32xbf16>
    %46 = vector.shape_cast %45 : vector<1x160x32xbf16> to vector<160x32xbf16>
    %c0_23 = arith.constant 0 : index
    %c0_24 = arith.constant 0 : index
    %c0_25 = arith.constant 0 : index
    %47 = vector.load %arg8[%c0_23, %c0_24, %c0_25] : memref<2x1x32xf32, #tpu.memory_space<vmem>>, vector<1x1x32xf32>
    %48 = vector.shape_cast %47 : vector<1x1x32xf32> to vector<1x32xf32>
    %c0_26 = arith.constant 0 : index
    %c0_27 = arith.constant 0 : index
    %c0_28 = arith.constant 0 : index
    %49 = vector.load %arg9[%c0_26, %c0_27, %c0_28] : memref<2x1x32xf32, #tpu.memory_space<vmem>>, vector<1x1x32xf32>
    %50 = vector.shape_cast %49 : vector<1x1x32xf32> to vector<1x32xf32>
    %c0_29 = arith.constant 0 : index
    %c0_30 = arith.constant 0 : index
    %c0_31 = arith.constant 0 : index
    %51 = vector.load %arg10[%c0_29, %c0_30, %c0_31] : memref<2x1x32xf32, #tpu.memory_space<vmem>>, vector<1x1x32xf32>
    %52 = vector.shape_cast %51 : vector<1x1x32xf32> to vector<1x32xf32>
    %cst_32 = arith.constant 0.000000e+00 : f32
    %53 = vector.broadcast %cst_32 : f32 to vector<2x32xf32>
    %54 = tpu.concatenate %53, %44, %53 in 0 : vector<2x32xf32>, vector<16x32xf32>, vector<2x32xf32> -> vector<20x32xf32>
    %55 = vector.extract_strided_slice %54 {offsets = [0, 0], sizes = [16, 32], strides = [1, 1]} : vector<20x32xf32> to vector<16x32xf32>
    %56 = vector.extract_strided_slice %54 {offsets = [1, 0], sizes = [16, 32], strides = [1, 1]} : vector<20x32xf32> to vector<16x32xf32>
    %57 = vector.extract_strided_slice %54 {offsets = [2, 0], sizes = [16, 32], strides = [1, 1]} : vector<20x32xf32> to vector<16x32xf32>
    %58 = vector.extract_strided_slice %54 {offsets = [3, 0], sizes = [16, 32], strides = [1, 1]} : vector<20x32xf32> to vector<16x32xf32>
    %59 = vector.extract_strided_slice %54 {offsets = [4, 0], sizes = [16, 32], strides = [1, 1]} : vector<20x32xf32> to vector<16x32xf32>
    %60 = tpu.concatenate %55, %56, %57, %58, %59 in 1 : vector<16x32xf32>, vector<16x32xf32>, vector<16x32xf32>, vector<16x32xf32>, vector<16x32xf32> -> vector<16x160xf32>
    %61 = arith.truncf %60 : vector<16x160xf32> to vector<16x160xbf16>
    %cst_33 = arith.constant dense<0.000000e+00> : vector<16x32xf32>
    %62 = tpu.matmul %61, %46, %cst_33 {dimension_numbers = #tpu.dot_dimension_numbers<[1], [0], [0], [1], [0, 0, 1, 1], [], []>} : vector<16x160xbf16>, vector<160x32xbf16>, vector<16x32xf32> -> vector<16x32xf32>
    %63 = vector.broadcast %48 : vector<1x32xf32> to vector<16x32xf32>
    %64 = arith.addf %62, %63 : vector<16x32xf32>
    %cst_34 = arith.constant 0.000000e+00 : f32
    %65 = vector.broadcast %cst_34 : f32 to vector<16x32xf32>
    %66 = arith.maximumf %64, %65 : vector<16x32xf32>
    %cst_35 = arith.constant dense<0.000000e+00> : vector<16xf32>
    %67 = vector.multi_reduction <add>, %66, %cst_35 [1] : vector<16x32xf32> to vector<16xf32>
    %68 = vector.shape_cast %67 : vector<16xf32> to vector<16x1xf32>
    %cst_36 = arith.constant 3.200000e+01 : f32
    %69 = vector.broadcast %cst_36 : f32 to vector<16x1xf32>
    %70 = arith.divf %68, %69 : vector<16x1xf32>
    %71 = vector.broadcast %70 : vector<16x1xf32> to vector<16x32xf32>
    %72 = arith.subf %66, %71 : vector<16x32xf32>
    %73 = arith.mulf %72, %72 : vector<16x32xf32>
    %cst_37 = arith.constant dense<0.000000e+00> : vector<16xf32>
    %74 = vector.multi_reduction <add>, %73, %cst_37 [1] : vector<16x32xf32> to vector<16xf32>
    %75 = vector.shape_cast %74 : vector<16xf32> to vector<16x1xf32>
    %cst_38 = arith.constant 3.200000e+01 : f32
    %76 = vector.broadcast %cst_38 : f32 to vector<16x1xf32>
    %77 = arith.divf %75, %76 : vector<16x1xf32>
    %78 = vector.broadcast %70 : vector<16x1xf32> to vector<16x32xf32>
    %79 = arith.subf %66, %78 : vector<16x32xf32>
    %cst_39 = arith.constant 9.99999996E-13 : f32
    %80 = vector.broadcast %cst_39 : f32 to vector<16x1xf32>
    %81 = arith.addf %77, %80 : vector<16x1xf32>
    %82 = math.rsqrt %81 : vector<16x1xf32>
    %83 = vector.broadcast %82 : vector<16x1xf32> to vector<16x32xf32>
    %84 = arith.mulf %79, %83 : vector<16x32xf32>
    %85 = vector.broadcast %50 : vector<1x32xf32> to vector<16x32xf32>
    %86 = arith.mulf %84, %85 : vector<16x32xf32>
    %87 = vector.broadcast %52 : vector<1x32xf32> to vector<16x32xf32>
    %88 = arith.addf %86, %87 : vector<16x32xf32>
    %c1 = arith.constant 1 : index
    %c0_40 = arith.constant 0 : index
    %c0_41 = arith.constant 0 : index
    %89 = vector.load %arg7[%c1, %c0_40, %c0_41] : memref<2x160x32xbf16, #tpu.memory_space<vmem>>, vector<1x160x32xbf16>
    %90 = vector.shape_cast %89 : vector<1x160x32xbf16> to vector<160x32xbf16>
    %c1_42 = arith.constant 1 : index
    %c0_43 = arith.constant 0 : index
    %c0_44 = arith.constant 0 : index
    %91 = vector.load %arg8[%c1_42, %c0_43, %c0_44] : memref<2x1x32xf32, #tpu.memory_space<vmem>>, vector<1x1x32xf32>
    %92 = vector.shape_cast %91 : vector<1x1x32xf32> to vector<1x32xf32>
    %c1_45 = arith.constant 1 : index
    %c0_46 = arith.constant 0 : index
    %c0_47 = arith.constant 0 : index
    %93 = vector.load %arg9[%c1_45, %c0_46, %c0_47] : memref<2x1x32xf32, #tpu.memory_space<vmem>>, vector<1x1x32xf32>
    %94 = vector.shape_cast %93 : vector<1x1x32xf32> to vector<1x32xf32>
    %c1_48 = arith.constant 1 : index
    %c0_49 = arith.constant 0 : index
    %c0_50 = arith.constant 0 : index
    %95 = vector.load %arg10[%c1_48, %c0_49, %c0_50] : memref<2x1x32xf32, #tpu.memory_space<vmem>>, vector<1x1x32xf32>
    %96 = vector.shape_cast %95 : vector<1x1x32xf32> to vector<1x32xf32>
    %cst_51 = arith.constant 0.000000e+00 : f32
    %97 = vector.broadcast %cst_51 : f32 to vector<2x32xf32>
    %98 = tpu.concatenate %97, %88, %97 in 0 : vector<2x32xf32>, vector<16x32xf32>, vector<2x32xf32> -> vector<20x32xf32>
    %99 = vector.extract_strided_slice %98 {offsets = [0, 0], sizes = [16, 32], strides = [1, 1]} : vector<20x32xf32> to vector<16x32xf32>
    %100 = vector.extract_strided_slice %98 {offsets = [1, 0], sizes = [16, 32], strides = [1, 1]} : vector<20x32xf32> to vector<16x32xf32>
    %101 = vector.extract_strided_slice %98 {offsets = [2, 0], sizes = [16, 32], strides = [1, 1]} : vector<20x32xf32> to vector<16x32xf32>
    %102 = vector.extract_strided_slice %98 {offsets = [3, 0], sizes = [16, 32], strides = [1, 1]} : vector<20x32xf32> to vector<16x32xf32>
    %103 = vector.extract_strided_slice %98 {offsets = [4, 0], sizes = [16, 32], strides = [1, 1]} : vector<20x32xf32> to vector<16x32xf32>
    %104 = tpu.concatenate %99, %100, %101, %102, %103 in 1 : vector<16x32xf32>, vector<16x32xf32>, vector<16x32xf32>, vector<16x32xf32>, vector<16x32xf32> -> vector<16x160xf32>
    %105 = arith.truncf %104 : vector<16x160xf32> to vector<16x160xbf16>
    %cst_52 = arith.constant dense<0.000000e+00> : vector<16x32xf32>
    %106 = tpu.matmul %105, %90, %cst_52 {dimension_numbers = #tpu.dot_dimension_numbers<[1], [0], [0], [1], [0, 0, 1, 1], [], []>} : vector<16x160xbf16>, vector<160x32xbf16>, vector<16x32xf32> -> vector<16x32xf32>
    %107 = vector.broadcast %92 : vector<1x32xf32> to vector<16x32xf32>
    %108 = arith.addf %106, %107 : vector<16x32xf32>
    %cst_53 = arith.constant 0.000000e+00 : f32
    %109 = vector.broadcast %cst_53 : f32 to vector<16x32xf32>
    %110 = arith.maximumf %108, %109 : vector<16x32xf32>
    %cst_54 = arith.constant dense<0.000000e+00> : vector<16xf32>
    %111 = vector.multi_reduction <add>, %110, %cst_54 [1] : vector<16x32xf32> to vector<16xf32>
    %112 = vector.shape_cast %111 : vector<16xf32> to vector<16x1xf32>
    %cst_55 = arith.constant 3.200000e+01 : f32
    %113 = vector.broadcast %cst_55 : f32 to vector<16x1xf32>
    %114 = arith.divf %112, %113 : vector<16x1xf32>
    %115 = vector.broadcast %114 : vector<16x1xf32> to vector<16x32xf32>
    %116 = arith.subf %110, %115 : vector<16x32xf32>
    %117 = arith.mulf %116, %116 : vector<16x32xf32>
    %cst_56 = arith.constant dense<0.000000e+00> : vector<16xf32>
    %118 = vector.multi_reduction <add>, %117, %cst_56 [1] : vector<16x32xf32> to vector<16xf32>
    %119 = vector.shape_cast %118 : vector<16xf32> to vector<16x1xf32>
    %cst_57 = arith.constant 3.200000e+01 : f32
    %120 = vector.broadcast %cst_57 : f32 to vector<16x1xf32>
    %121 = arith.divf %119, %120 : vector<16x1xf32>
    %122 = vector.broadcast %114 : vector<16x1xf32> to vector<16x32xf32>
    %123 = arith.subf %110, %122 : vector<16x32xf32>
    %cst_58 = arith.constant 9.99999996E-13 : f32
    %124 = vector.broadcast %cst_58 : f32 to vector<16x1xf32>
    %125 = arith.addf %121, %124 : vector<16x1xf32>
    %126 = math.rsqrt %125 : vector<16x1xf32>
    %127 = vector.broadcast %126 : vector<16x1xf32> to vector<16x32xf32>
    %128 = arith.mulf %123, %127 : vector<16x32xf32>
    %129 = vector.broadcast %94 : vector<1x32xf32> to vector<16x32xf32>
    %130 = arith.mulf %128, %129 : vector<16x32xf32>
    %131 = vector.broadcast %96 : vector<1x32xf32> to vector<16x32xf32>
    %132 = arith.addf %130, %131 : vector<16x32xf32>
    %133 = arith.truncf %132 : vector<16x32xf32> to vector<16x32xbf16>
    %c0_59 = arith.constant 0 : index
    %c0_60 = arith.constant 0 : index
    %134 = vector.load %arg11[%c0_59, %c0_60] : memref<32x2xbf16, #tpu.memory_space<vmem>>, vector<32x2xbf16>
    %cst_61 = arith.constant dense<0.000000e+00> : vector<16x2xf32>
    %135 = tpu.matmul %133, %134, %cst_61 {dimension_numbers = #tpu.dot_dimension_numbers<[1], [0], [0], [1], [0, 0, 1, 1], [], []>} : vector<16x32xbf16>, vector<32x2xbf16>, vector<16x2xf32> -> vector<16x2xf32>
    %c0_62 = arith.constant 0 : index
    %c0_63 = arith.constant 0 : index
    %136 = vector.load %arg12[%c0_62, %c0_63] : memref<1x2xf32, #tpu.memory_space<vmem>>, vector<1x2xf32>
    %137 = vector.broadcast %136 : vector<1x2xf32> to vector<16x2xf32>
    %138 = arith.addf %135, %137 : vector<16x2xf32>
    %c0_64 = arith.constant 0 : index
    %c0_65 = arith.constant 0 : index
    %c0_66 = arith.constant 0 : index
    %139 = vector.load %arg13[%c0_64, %c0_65, %c0_66] : memref<1x16x2xf32, #tpu.memory_space<vmem>>, vector<1x16x2xf32>
    %140 = vector.shape_cast %139 : vector<1x16x2xf32> to vector<16x2xf32>
    %141 = vector.shape_cast %138 : vector<16x2xf32> to vector<1x16x2xf32>
    tpu.vector_store %arg13[%c0_64, %c0_65, %c0_66], %141 {strides = array<i32>} : memref<1x16x2xf32, #tpu.memory_space<vmem>>, vector<1x16x2xf32>,
    return
  }
  func.func @transform_0(%arg0: i32) -> (i32, i32, i32) {
    %c0_i32 = arith.constant 0 : i32
    %c0_i32_0 = arith.constant 0 : i32
    %c0_i32_1 = arith.constant 0 : i32
    return %arg0, %c0_i32, %c0_i32_0 : i32, i32, i32
  }
  func.func @transform_1(%arg0: i32) -> (i32, i32, i32) {
    %c0_i32 = arith.constant 0 : i32
    %c0_i32_0 = arith.constant 0 : i32
    %c0_i32_1 = arith.constant 0 : i32
    return %arg0, %c0_i32, %c0_i32_0 : i32, i32, i32
  }
  func.func @transform_2(%arg0: i32) -> (i32, i32) {
    %c0_i32 = arith.constant 0 : i32
    %c0_i32_0 = arith.constant 0 : i32
    %c0_i32_1 = arith.constant 0 : i32
    return %c0_i32, %c0_i32_0 : i32, i32
  }
  func.func @transform_3(%arg0: i32) -> (i32, i32) {
    %c0_i32 = arith.constant 0 : i32
    %c0_i32_0 = arith.constant 0 : i32
    %c0_i32_1 = arith.constant 0 : i32
    return %c0_i32, %c0_i32_0 : i32, i32
  }
  func.func @transform_4(%arg0: i32) -> (i32, i32) {
    %c0_i32 = arith.constant 0 : i32
    %c0_i32_0 = arith.constant 0 : i32
    %c0_i32_1 = arith.constant 0 : i32
    return %c0_i32, %c0_i32_0 : i32, i32
  }
  func.func @transform_5(%arg0: i32) -> (i32, i32) {
    %c0_i32 = arith.constant 0 : i32
    %c0_i32_0 = arith.constant 0 : i32
    %c0_i32_1 = arith.constant 0 : i32
    return %c0_i32, %c0_i32_0 : i32, i32
  }
  func.func @transform_6(%arg0: i32) -> (i32, i32, i32) {
    %c0_i32 = arith.constant 0 : i32
    %c0_i32_0 = arith.constant 0 : i32
    %c0_i32_1 = arith.constant 0 : i32
    %c0_i32_2 = arith.constant 0 : i32
    return %c0_i32, %c0_i32_0, %c0_i32_1 : i32, i32, i32
  }
  func.func @transform_7(%arg0: i32) -> (i32, i32, i32) {
    %c0_i32 = arith.constant 0 : i32
    %c0_i32_0 = arith.constant 0 : i32
    %c0_i32_1 = arith.constant 0 : i32
    %c0_i32_2 = arith.constant 0 : i32
    return %c0_i32, %c0_i32_0, %c0_i32_1 : i32, i32, i32
  }
  func.func @transform_8(%arg0: i32) -> (i32, i32, i32) {
    %c0_i32 = arith.constant 0 : i32
    %c0_i32_0 = arith.constant 0 : i32
    %c0_i32_1 = arith.constant 0 : i32
    %c0_i32_2 = arith.constant 0 : i32
    return %c0_i32, %c0_i32_0, %c0_i32_1 : i32, i32, i32
  }
  func.func @transform_9(%arg0: i32) -> (i32, i32, i32) {
    %c0_i32 = arith.constant 0 : i32
    %c0_i32_0 = arith.constant 0 : i32
    %c0_i32_1 = arith.constant 0 : i32
    %c0_i32_2 = arith.constant 0 : i32
    return %c0_i32, %c0_i32_0, %c0_i32_1 : i32, i32, i32
  }
  func.func @transform_10(%arg0: i32) -> (i32, i32) {
    %c0_i32 = arith.constant 0 : i32
    %c0_i32_0 = arith.constant 0 : i32
    %c0_i32_1 = arith.constant 0 : i32
    return %c0_i32, %c0_i32_0 : i32, i32
  }
  func.func @transform_11(%arg0: i32) -> (i32, i32) {
    %c0_i32 = arith.constant 0 : i32
    %c0_i32_0 = arith.constant 0 : i32
    %c0_i32_1 = arith.constant 0 : i32
    return %c0_i32, %c0_i32_0 : i32, i32
  }
  func.func @transform_12(%arg0: i32) -> (i32, i32, i32) {
    %c0_i32 = arith.constant 0 : i32
    %c0_i32_0 = arith.constant 0 : i32
    %c0_i32_1 = arith.constant 0 : i32
    return %arg0, %c0_i32, %c0_i32_0 : i32, i32, i32
  }
}

</mosaic_0001>

<bundles_post_ra>
// kernel: tpu_custom_call.1
= control target key start
LH: loop header
LB: loop body
LE: loop exit
PB: predicated region body
PF: predicated region fallthrough
CT: control target
= control target key end

     0   :  { %s1581_s21 = smov 0   ;;  %s1852_s0 = inlined_call_operand.vmem [shape: f32[2,16,32], index: 0, kind: input, shape index: {}]   ;;  %s1853_s1 = inlined_call_operand.vmem [shape: f32[2,16,32], index: 1, kind: input, shape index: {}]   ;;  %s1854_s2 = inlined_call_operand.vmem [shape: bf16[160,32], index: 2, kind: input, shape index: {}]   ;;  %s1855_s3 = inlined_call_operand.vmem [shape: f32[1,32], index: 3, kind: input, shape index: {}]   ;;  %s1856_s4 = inlined_call_operand.vmem [shape: f32[1,32], index: 4, kind: input, shape index: {}]   ;;  %s1857_s5 = inlined_call_operand.vmem [shape: f32[1,32], index: 5, kind: input, shape index: {}]   ;;  %s1858_s6 = inlined_call_operand.vmem [shape: bf16[2,160,32], index: 6, kind: input, shape index: {}]   ;;  %s1859_s7 = inlined_call_operand.vmem [shape: f32[2,1,32], index: 7, kind: input, shape index: {}]   ;;  %s1860_s8 = inlined_call_operand.vmem [shape: f32[2,1,32], index: 8, kind: input, shape index: {}]   ;;  %s1861_s9 = inlined_call_operand.vmem [shape: f32[2,1,32], index: 9, kind: input, shape index: {}]   ;;  %s1862_s10 = inlined_call_operand.vmem [shape: bf16[32,2], index: 10, kind: input, shape index: {}]   ;;  %s1863_s11 = inlined_call_operand.vmem [shape: f32[1,2], index: 11, kind: input, shape index: {}]   ;;  %s1864_s12 = inlined_call_operand.vmem [shape: f32[2,16,2], index: 12, kind: output, shape index: {}]  }
   0x1 LB: > { %s1303_s22 = sadd.s32 4294967295, %s1508_s21   ;;  %p1307_p0 = scmp.ge.s32.totalorder %s1508_s21, 1  ;;  %s1508_s21 = sphi %s1581_s21, %s22_s21  }
   0x2   : > { %p372_p1 = scmp.lt.s32.totalorder %s1508_s21, 3 }
   0x4   : > { %p373_p2 = pnand %p1307_p0, %p372_p1 }
   0x5   : > { %p419_p3 = scmp.lt.s32.totalorder (!%p373_p2), %s1303_s22, 1  ;;  %s1511_s23 = smov (!%p373_p2), 32  }
   0x6   : > { %376 = sbr.rel (%p373_p2) target bundleno = 2145 (0x861), region = 68  ;;  %s1512_s26 = smov (!%p373_p2), 96  }
   0xb   : > { %v1458_v0 = vld [vmem:[%s1854_s2 + $0x38] sm:$0xff]   ;;  %s1866_s22 = smov (!%p419_p3, %s1303_s22), 1  ;;  %v1510_v1 = vmov 0   ;;  %v1459_v2 = vld [vmem:[%s1854_s2 + $0x30] sm:$0xff]   ;;  %v1460_v8 = vld [vmem:[%s1854_s2 + $0x28] sm:$0xff]   ;;  %vm466_vm0 = vcmask 1041408  }
   0xc   : > { %601 = vmatprep.subr.bf16.mxu0 %v1510_v1  ;;  %839 = vmatprep.subr.bf16.mxu1 %v1510_v1  ;;  %s1597_s27 = sshll.u32 %s1866_s22, 4  ;;  %vm477_vm1 = vcmask 1046528   ;;  %vm489_vm2 = vcmask 1045504   ;;  %vm501_vm3 = vcmask 1044480   ;;  %v1461_v13 = vld [vmem:[%s1854_s2 + $0x20] sm:$0xff]   ;;  %vm513_vm4 = vcmask 1043456  }
   0xd   : > { %602 = vmatpush1.bf16.msra.mxu0 %v1458_v0  ;;  %s423_s30 = scalar_lea.vmem %s1852_s0, %s1597_s27  ;;  %s428_s15 = scalar_lea.vmem %s1853_s1, %s1597_s27  ;;  %v1462_v29 = vld [vmem:[%s1854_s2 + $0x18] sm:$0xff]   ;;  %v1463_v38 = vld [vmem:[%s1854_s2 + $0x10] sm:$0xff]   ;;  %vm521_vm5 = vcmask 261120   ;;  %v1464_v42 = vld [vmem:[%s1854_s2 + $0x8] sm:$0xff]   ;;  %vm524_vm6 = vcmask 523264   ;;  %vm527_vm7 = vcmask 785408  }
   0xe   : > { %603 = vmatprep.subr.bf16.mxu0 %v1510_v1  ;;  %v435_v3 = vld [vmem:[%s423_s30] sm:$0xff]  ;;  %v436_v4 = vld [vmem:[%s423_s30 + $0x8] sm:$0xff]  ;;  %s1513_s30 = smov 64   ;;  %vm1515_vm8 = vmmov 0   ;;  %s433_s17 = scalar_lea.vmem %s1864_s12, %s1597_s27  ;;  %vm1233_vm9 = vcmask 15360  }
   0xf   : > { %v437_v5 = vld [vmem:[%s428_s15] sm:$0xff]  ;;  %v438_v6 = vld [vmem:[%s428_s15 + $0x8] sm:$0xff] }
  0x10   : > { %v439_v7 = vadd.f32 %v437_v5, %v435_v3  ;;  %v440_v9 = vadd.f32 %v438_v6, %v436_v4  ;;  %v1465_v43 = vld [vmem:[%s1854_s2] sm:$0xff]   ;;  %v1466_v44 = vld [vmem:[%s1854_s2 + $0x48] sm:$0xff]  }
  0x11   : > { %604 = vmatpush1.bf16.msra.mxu0 %v1459_v2  ;;  %v1467_v45 = vld [vmem:[%s1854_s2 + $0x40] sm:$0xff]  }
  0x12   : > { %605 = vmatprep.subr.bf16.mxu0 %v1510_v1  ;;  %v467_v10 = vrot.slane %v439_v7, 6  ;;  %v468_v11 = vrot.slane %v440_v9, 6  ;;  %v1314_v62 = vld [vmem:[%s1855_s3] ss:$0 sm:$0xff] }
  0x14   : > { %v1613_v12 = vsel %vm466_vm0, 0.0, %v467_v10  ;;  %v1619_v14 = vsel %vm466_vm0, %v467_v10, %v468_v11  ;;  %v474_v15 = vsel %vm466_vm0, %v468_v11, 0.0 }
  0x15   : > { %606 = vmatpush1.bf16.msra.mxu0 %v1460_v8  ;;  %v478_v16 = vrot.slane %v1613_v12, 1  ;;  %v490_v17 = vrot.slane %v1613_v12, 2  ;;  %v479_v18 = vrot.slane %v1619_v14, 1  ;;  %v481_v19 = vrot.slane %v474_v15, 1 }
  0x16   : > { %607 = vmatprep.subr.bf16.mxu0 %v1510_v1  ;;  %v491_v20 = vrot.slane %v1619_v14, 2  ;;  %v493_v21 = vrot.slane %v474_v15, 2  ;;  %v502_v22 = vrot.slane %v1613_v12, 3  ;;  %v503_v23 = vrot.slane %v1619_v14, 3 }
  0x17   : > { %v505_v24 = vrot.slane %v474_v15, 3  ;;  %v480_v25 = vsel %vm477_vm1, %v478_v16, %v479_v18  ;;  %v482_v26 = vsel %vm477_vm1, %v479_v18, %v481_v19  ;;  %v514_v34 = vrot.slane %v1613_v12, 4 }
  0x18   : > { %v492_v27 = vsel %vm489_vm2, %v490_v17, %v491_v20  ;;  %v494_v28 = vsel %vm489_vm2, %v491_v20, %v493_v21  ;;  %v1413_v30 = vpack.i.bf16 %v482_v26, %v480_v25  ;;  %v504_v31 = vsel %vm501_vm3, %v502_v22, %v503_v23  ;;  %v1468_v20 = vld [vmem:[%s1858_s6 + $0x38] sm:$0xff]   ;;  %v1469_v21 = vld [vmem:[%s1858_s6 + $0x30] sm:$0xff]   ;;  %v1470_v22 = vld [vmem:[%s1858_s6 + $0x28] sm:$0xff]  }
  0x19   : > { %608 = vmatpush1.bf16.msra.mxu0 %v1461_v13  ;;  %v506_v32 = vsel %vm501_vm3, %v503_v23, %v505_v24  ;;  %v515_v35 = vrot.slane %v1619_v14, 4  ;;  %v517_v36 = vrot.slane %v474_v15, 4  ;;  %v1418_v37 = vpack.i.bf16 %v494_v28, %v492_v27  ;;  %840 = vmatpush1.bf16.msra.mxu1 %v1468_v20  ;;  %v1471_v23 = vld [vmem:[%s1858_s6 + $0x20] sm:$0xff]   ;;  %v1472_v24 = vld [vmem:[%s1858_s6 + $0x18] sm:$0xff]   ;;  %v1473_v25 = vld [vmem:[%s1858_s6 + $0x10] sm:$0xff]  }
  0x1a   : > { %609 = vmatprep.subr.bf16.mxu0 %v1510_v1  ;;  %v1423_v33 = vpack.i.bf16 %v506_v32, %v504_v31  ;;  %1414 = vrot.lane.b32.xlu0 %v1413_v30, %s1511_s23  ;;  %v1474_v26 = vld [vmem:[%s1858_s6 + $0x8] sm:$0xff]   ;;  %v1475_v27 = vld [vmem:[%s1858_s6] sm:$0xff]  }
  0x1b   : > { %v516_v39 = vsel %vm513_vm4, %v514_v34, %v515_v35  ;;  %v518_v40 = vsel %vm513_vm4, %v515_v35, %v517_v36  ;;  %841 = vmatprep.subr.bf16.mxu1 %v1510_v1  ;;  %v1326_v35 = vld [vmem:[%s1856_s4] ss:$0 sm:$0xff] }
  0x1c   : > { %1424 = vrot.lane.b32.xlu1 %v1423_v33, %s1512_s26  ;;  %v531_v41 = vpack.c.bf16 %v518_v40, %v516_v39 }
  0x1d   : > { %610 = vmatpush1.bf16.msra.mxu0 %v1462_v29  ;;  %842 = vmatpush1.bf16.msra.mxu1 %v1469_v21 }
  0x1e   : > { %611 = vmatprep.subr.bf16.mxu0 %v1510_v1  ;;  %1419 = vrot.lane.b32.xlu0 %v1418_v37, %s1513_s30  ;;  %v1327_v37 = vld [vmem:[%s1857_s5] ss:$0 sm:$0xff] }
  0x1f   : > { %1325 = vmatprep.mubr.msk.bf16.mxu0 %vm521_vm5, %v531_v41  ;;  %843 = vmatprep.subr.bf16.mxu1 %v1510_v1 }
  0x21   : > { %612 = vmatpush1.bf16.msra.mxu0 %v1463_v38  ;;  %844 = vmatpush1.bf16.msra.mxu1 %v1470_v22 }
  0x22   : > { %613 = vmatprep.subr.bf16.mxu0 %v1510_v1  ;;  %845 = vmatprep.subr.bf16.mxu1 %v1510_v1 }
  0x25   : > { %614 = vmatpush1.bf16.msra.mxu0 %v1464_v42  ;;  %846 = vmatpush1.bf16.msra.mxu1 %v1471_v23 }
  0x26   : > { %615 = vmatprep.subr.bf16.mxu0 %v1510_v1  ;;  %847 = vmatprep.subr.bf16.mxu1 %v1510_v1 }
  0x29   : > { %616 = vmatpush1.bf16.msra.mxu0 %v1465_v43  ;;  %848 = vmatpush1.bf16.msra.mxu1 %v1472_v24 }
  0x2a   : > { %629 = vmatprep.subr.bf16.mxu0 %v1510_v1  ;;  %849 = vmatprep.subr.bf16.mxu1 %v1510_v1 }
  0x2d   : > { %630 = vmatpush2.bf16.msra.mxu0 %v1466_v44  ;;  %850 = vmatpush1.bf16.msra.mxu1 %v1473_v25  ;;  %v1476_v44 = vld [vmem:[%s1858_s6 + $0x48] sm:$0xff]  }
  0x2e   : > { %631 = vmatprep.subr.bf16.mxu0 %v1510_v1  ;;  %851 = vmatprep.subr.bf16.mxu1 %v1510_v1 }
  0x31   : > { %632 = vmatpush2.bf16.msra.mxu0 %v1467_v45  ;;  %852 = vmatpush1.bf16.msra.mxu1 %v1474_v26 }
  0x32   : > { %1080 = vmatprep.subr.bf16.mxu0 %v1510_v1  ;;  %853 = vmatprep.subr.bf16.mxu1 %v1510_v1 }
  0x35   : > { %854 = vmatpush1.bf16.msra.mxu1 %v1475_v27 }
  0x36   : > { %867 = vmatprep.subr.bf16.mxu1 %v1510_v1 }
  0x39   : > { %868 = vmatpush2.bf16.msra.mxu1 %v1476_v44 }
  0x3a   : > { %869 = vmatprep.subr.bf16.mxu1 %v1510_v1 }
  0x8c   : > { %v1415_v46 = vpop.permute.xlu0 %1414 }
  0x8d   : > { %v1417_v48 = vunpack.i.h.bf16 %v1415_v46  ;;  %v1416_v49 = vunpack.i.l.bf16 %v1415_v46 }
  0x8e   : > { %v1425_v47 = vpop.permute.xlu1 %1424 }
  0x8f   : > { %v1427_v51 = vunpack.i.h.bf16 %v1425_v47  ;;  %v1426_v52 = vunpack.i.l.bf16 %v1425_v47  ;;  %v523_v55 = vsel %vm521_vm5, %v1619_v14, %v1417_v48  ;;  %v522_v56 = vsel %vm521_vm5, %v1613_v12, %v1416_v49  ;;  %v1477_v47 = vld [vmem:[%s1858_s6 + $0x40] sm:$0xff]  }
  0x90   : > { %v1420_v50 = vpop.permute.xlu0 %1419  ;;  %870 = vmatpush2.bf16.msra.mxu1 %v1477_v47 }
  0x91   : > { %v1422_v53 = vunpack.i.h.bf16 %v1420_v50  ;;  %v1421_v54 = vunpack.i.l.bf16 %v1420_v50 }
  0x93   : > { %v525_v57 = vsel %vm524_vm6, %v522_v56, %v1421_v54  ;;  %v526_v58 = vsel %vm524_vm6, %v523_v55, %v1422_v53 }
  0x94   : > { %v528_v59 = vsel %vm527_vm7, %v525_v57, %v1426_v52  ;;  %v529_v60 = vsel %vm527_vm7, %v526_v58, %v1427_v51 }
  0x95   : > { %v530_v61 = vpack.c.bf16 %v529_v60, %v528_v59 }
  0x97   : > { %634 = vmatmul.mubr.bf16.vlgmr.msra.gmra.mxu0 %v530_v61 }
 0x157   : > { %v635_v63 = vpop.f32.mrf.mxu0 }
 0x158   : > { %v636_v0 = vadd.f32 %v1314_v62, %v635_v63 }
 0x159   : > { %v637_v2 = vpop.f32.mrf.mxu0 }
 0x15a   : > { %v642_v3 = vmax.f32 %v636_v0, 0.0 }
 0x15b   : > { %v638_v4 = vpop.f32.mrf.mxu0 }
 0x15c   : > { %v639_v5 = vadd.f32 %v1314_v62, %v638_v4  ;;  %v644_v6 = vsel %vm521_vm5, %v642_v3, 0.0 }
 0x15d   : > { %v640_v7 = vpop.f32.mrf.mxu0  ;;  %645 = vadd.xlane.f32.xlu1 %v644_v6 }
 0x15e   : > { %v643_v8 = vmax.f32 %v639_v5, 0.0 }
 0x160   : > { %v647_v9 = vsel %vm521_vm5, %v643_v8, 0.0 }
 0x161   : > { %648 = vadd.xlane.f32.xlu0 %v647_v9 }
 0x1e6   : > { %v646_v10 = vpop.xlane.xlu1 %645 }
 0x1e7   : > { %v651_v11 = vmul.f32 0.03125, %v646_v10 }
 0x1e9   : > { %v653_v12 = vsub.f32 %v642_v3, %v651_v11 }
 0x1ea   : > { %v649_v13 = vpop.xlane.xlu0 %648 }
 0x1eb   : > { %v652_v14 = vmul.f32 0.03125, %v649_v13  ;;  %v655_v15 = vmul.f32 %v653_v12, %v653_v12 }
 0x1ed   : > { %v654_v16 = vsub.f32 %v643_v8, %v652_v14  ;;  %v657_v17 = vsel %vm521_vm5, %v655_v15, 0.0 }
 0x1ee   : > { %658 = vadd.xlane.f32.xlu0 %v657_v17 }
 0x1ef   : > { %v656_v18 = vmul.f32 %v654_v16, %v654_v16 }
 0x1f1   : > { %v660_v19 = vsel %vm521_vm5, %v656_v18, 0.0 }
 0x1f2   : > { %661 = vadd.xlane.f32.xlu1 %v660_v19 }
 0x277   : > { %v659_v28 = vpop.xlane.xlu0 %658 }
 0x278   : > { %v663_v29 = vmul.f32 0.03125, %v659_v28  ;;  %v1328_v28 = vld [vmem:[%s1859_s7] ss:$0 sm:$0xff] }
 0x27a   : > { %v665_v30 = vadd.f32 1e-12, %v663_v29 }
 0x27b   : > { %v662_v31 = vpop.xlane.xlu1 %661 }
 0x27c   : > { %1490 = vrsqrt.f32 %v665_v30  ;;  %v664_v32 = vmul.f32 0.03125, %v662_v31 }
 0x27e   : > { %v666_v33 = vadd.f32 1e-12, %v664_v32 }
 0x280   : > { %1492 = vrsqrt.f32 %v666_v33 }
 0x289   : > { %v1491_v34 = vpop.eup %1490 }
 0x28a   : > { %v669_v36 = vmul.f32 %v1491_v34, %v653_v12 }
 0x28c   : > { %v677_v38 = vmul.f32 %v1326_v35, %v669_v36 }
 0x28d   : > { %v1493_v39 = vpop.eup %1492 }
 0x28e   : > { %v670_v40 = vmul.f32 %v1493_v39, %v654_v16  ;;  %v685_v41 = vadd.f32 %v1327_v37, %v677_v38 }
 0x290   : > { %v678_v42 = vmul.f32 %v1326_v35, %v670_v40  ;;  %v712_v43 = vrot.slane %v685_v41, 6 }
 0x292   : > { %v686_v45 = vadd.f32 %v1327_v37, %v678_v42  ;;  %v718_v46 = vsel %vm466_vm0, 0.0, %v712_v43 }
 0x293   : > { %v755_v49 = vrot.slane %v718_v46, 4  ;;  %v733_v50 = vrot.slane %v718_v46, 2  ;;  %v722_v53 = vrot.slane %v718_v46, 1  ;;  %v744_v54 = vrot.slane %v718_v46, 3 }
 0x294   : > { %v713_v48 = vrot.slane %v686_v45, 6 }
 0x296   : > { %v714_v51 = vsel %vm466_vm0, %v712_v43, %v713_v48  ;;  %v719_v52 = vsel %vm466_vm0, %v713_v48, 0.0 }
 0x297   : > { %v756_v55 = vrot.slane %v714_v51, 4  ;;  %v758_v56 = vrot.slane %v719_v52, 4  ;;  %v734_v57 = vrot.slane %v714_v51, 2  ;;  %v736_v58 = vrot.slane %v719_v52, 2 }
 0x298   : > { %v723_v59 = vrot.slane %v714_v51, 1  ;;  %v725_v60 = vrot.slane %v719_v52, 1  ;;  %v745_v61 = vrot.slane %v714_v51, 3  ;;  %v747_v62 = vrot.slane %v719_v52, 3  ;;  %v1481_v52 = vld [vmem:[%s1858_s6 + $0x70] sm:$0xff]  }
 0x299   : > { %v757_v63 = vsel %vm513_vm4, %v755_v49, %v756_v55  ;;  %v759_v0 = vsel %vm513_vm4, %v756_v55, %v758_v56  ;;  %v735_v2 = vsel %vm489_vm2, %v733_v50, %v734_v57  ;;  %v737_v3 = vsel %vm489_vm2, %v734_v57, %v736_v58  ;;  %v1478_v49 = vld [vmem:[%s1858_s6 + $0x88] sm:$0xff]   ;;  %v1479_v50 = vld [vmem:[%s1858_s6 + $0x80] sm:$0xff]   ;;  %v1484_v55 = vld [vmem:[%s1858_s6 + $0x58] sm:$0xff]  }
 0x29a   : > { %v769_v4 = vpack.c.bf16 %v759_v0, %v757_v63  ;;  %v1433_v5 = vpack.i.bf16 %v737_v3, %v735_v2  ;;  %v724_v6 = vsel %vm477_vm1, %v722_v53, %v723_v59  ;;  %v726_v7 = vsel %vm477_vm1, %v723_v59, %v725_v60  ;;  %1081 = vmatpush1.bf16.msra.mxu0 %v1478_v49  ;;  %v1482_v53 = vld [vmem:[%s1858_s6 + $0x68] sm:$0xff]   ;;  %v1485_v56 = vld [vmem:[%s1858_s6 + $0x50] sm:$0xff]   ;;  %v1340_v0 = vld [vmem:[%s1860_s8] ss:$0 sm:$0xff] }
 0x29b   : > { %v1428_v8 = vpack.i.bf16 %v726_v7, %v724_v6  ;;  %v746_v9 = vsel %vm501_vm3, %v744_v54, %v745_v61  ;;  %v748_v10 = vsel %vm501_vm3, %v745_v61, %v747_v62  ;;  %1082 = vmatprep.subr.bf16.mxu0 %v1510_v1  ;;  %v1483_v54 = vld [vmem:[%s1858_s6 + $0x60] sm:$0xff]  }
 0x29c   : > { %1339 = vmatprep.mubr.msk.bf16.mxu1 %vm521_vm5, %v769_v4  ;;  %1434 = vrot.lane.b32.xlu1 %v1433_v5, %s1513_s30  ;;  %v1438_v11 = vpack.i.bf16 %v748_v10, %v746_v9  ;;  %v1341_v3 = vld [vmem:[%s1861_s9] ss:$0 sm:$0xff]  ;;  %v1486_v10 = vld [vmem:[%s1858_s6 + $0x98] sm:$0xff]  }
 0x29d   : > { %1429 = vrot.lane.b32.xlu0 %v1428_v8, %s1511_s23 }
 0x29e   : > { %1083 = vmatpush1.bf16.msra.mxu0 %v1479_v50 }
 0x29f   : > { %1084 = vmatprep.subr.bf16.mxu0 %v1510_v1 }
 0x2a0   : > { %1439 = vrot.lane.b32.xlu1 %v1438_v11, %s1512_s26 }
 0x30e   : > { %v1435_v12 = vpop.permute.xlu1 %1434 }
 0x30f   : > { %v1430_v13 = vpop.permute.xlu0 %1429  ;;  %v1437_v14 = vunpack.i.h.bf16 %v1435_v12  ;;  %v1436_v15 = vunpack.i.l.bf16 %v1435_v12 }
 0x310   : > { %v1432_v16 = vunpack.i.h.bf16 %v1430_v13  ;;  %v1431_v17 = vunpack.i.l.bf16 %v1430_v13 }
 0x312   : > { %v763_v18 = vsel %vm521_vm5, %v714_v51, %v1432_v16  ;;  %v762_v19 = vsel %vm521_vm5, %v718_v46, %v1431_v17  ;;  %v1440_v20 = vpop.permute.xlu1 %1439  ;;  %v1480_v51 = vld [vmem:[%s1858_s6 + $0x78] sm:$0xff]   ;;  %v1487_v16 = vld [vmem:[%s1858_s6 + $0x90] sm:$0xff]  }
 0x313   : > { %v1442_v21 = vunpack.i.h.bf16 %v1440_v20  ;;  %v1441_v22 = vunpack.i.l.bf16 %v1440_v20  ;;  %v764_v23 = vsel %vm524_vm6, %v762_v19, %v1436_v15  ;;  %v765_v24 = vsel %vm524_vm6, %v763_v18, %v1437_v14  ;;  %1085 = vmatpush1.bf16.msra.mxu0 %v1480_v51 }
 0x314   : > { %1086 = vmatprep.subr.bf16.mxu0 %v1510_v1 }
 0x315   : > { %v766_v25 = vsel %vm527_vm7, %v764_v23, %v1441_v22  ;;  %v767_v26 = vsel %vm527_vm7, %v765_v24, %v1442_v21 }
 0x316   : > { %v768_v27 = vpack.c.bf16 %v767_v26, %v766_v25 }
 0x317   : > { %1087 = vmatpush1.bf16.msra.mxu0 %v1481_v52 }
 0x318   : > { %872 = vmatmul.mubr.bf16.vlgmr.msra.gmra.mxu1 %v768_v27  ;;  %1088 = vmatprep.subr.bf16.mxu0 %v1510_v1 }
 0x31b   : > { %1089 = vmatpush1.bf16.msra.mxu0 %v1482_v53 }
 0x31c   : > { %1090 = vmatprep.subr.bf16.mxu0 %v1510_v1 }
 0x31f   : > { %1091 = vmatpush1.bf16.msra.mxu0 %v1483_v54 }
 0x320   : > { %1092 = vmatprep.subr.bf16.mxu0 %v1510_v1 }
 0x323   : > { %1093 = vmatpush1.bf16.msra.mxu0 %v1484_v55 }
 0x324   : > { %1094 = vmatprep.subr.bf16.mxu0 %v1510_v1 }
 0x327   : > { %1095 = vmatpush1.bf16.msra.mxu0 %v1485_v56  ;;  %v1365_v56 = vld [vmem:[%s1859_s7 + $0x1] ss:$0 sm:$0xff] }
 0x328   : > { %1108 = vmatprep.subr.bf16.mxu0 %v1510_v1 }
 0x32b   : > { %1109 = vmatpush2.bf16.msra.mxu0 %v1486_v10 }
 0x32c   : > { %1110 = vmatprep.subr.bf16.mxu0 %v1510_v1 }
 0x32f   : > { %1111 = vmatpush2.bf16.msra.mxu0 %v1487_v16  ;;  %v1489_v16 = vld [vmem:[%s1862_s10] sm:$0xff]  }
 0x3d8   : > { %v873_v29 = vpop.f32.mrf.mxu1 }
 0x3d9   : > { %v874_v30 = vadd.f32 %v1328_v28, %v873_v29 }
 0x3da   : > { %v875_v31 = vpop.f32.mrf.mxu1 }
 0x3db   : > { %v880_v32 = vmax.f32 %v874_v30, 0.0 }
 0x3dc   : > { %v876_v33 = vpop.f32.mrf.mxu1 }
 0x3dd   : > { %v877_v34 = vadd.f32 %v1328_v28, %v876_v33  ;;  %v882_v35 = vsel %vm521_vm5, %v880_v32, 0.0 }
 0x3de   : > { %v878_v36 = vpop.f32.mrf.mxu1  ;;  %883 = vadd.xlane.f32.xlu0 %v882_v35 }
 0x3df   : > { %v881_v37 = vmax.f32 %v877_v34, 0.0 }
 0x3e1   : > { %v885_v38 = vsel %vm521_vm5, %v881_v37, 0.0 }
 0x3e2   : > { %886 = vadd.xlane.f32.xlu1 %v885_v38 }
 0x467   : > { %v884_v39 = vpop.xlane.xlu0 %883 }
 0x468   : > { %v888_v40 = vmul.f32 0.03125, %v884_v39 }
 0x46a   : > { %v890_v41 = vsub.f32 %v880_v32, %v888_v40 }
 0x46b   : > { %v887_v42 = vpop.xlane.xlu1 %886 }
 0x46c   : > { %v889_v43 = vmul.f32 0.03125, %v887_v42  ;;  %v892_v44 = vmul.f32 %v890_v41, %v890_v41 }
 0x46e   : > { %v891_v45 = vsub.f32 %v881_v37, %v889_v43  ;;  %v894_v46 = vsel %vm521_vm5, %v892_v44, 0.0 }
 0x46f   : > { %895 = vadd.xlane.f32.xlu0 %v894_v46 }
 0x470   : > { %v893_v47 = vmul.f32 %v891_v45, %v891_v45 }
 0x472   : > { %v897_v48 = vsel %vm521_vm5, %v893_v47, 0.0 }
 0x473   : > { %898 = vadd.xlane.f32.xlu0 %v897_v48 }
 0x4f8   : > { %v896_v57 = vpop.xlane.xlu0 %895 }
 0x4f9   : > { %v900_v58 = vmul.f32 0.03125, %v896_v57 }
 0x4fb   : > { %v902_v59 = vadd.f32 1e-12, %v900_v58 }
 0x4fc   : > { %v899_v60 = vpop.xlane.xlu0 %898 }
 0x4fd   : > { %1494 = vrsqrt.f32 %v902_v59  ;;  %v901_v61 = vmul.f32 0.03125, %v899_v60 }
 0x4ff   : > { %v903_v62 = vadd.f32 1e-12, %v901_v61 }
 0x501   : > { %1496 = vrsqrt.f32 %v903_v62 }
 0x50a   : > { %v1495_v63 = vpop.eup %1494 }
 0x50b   : > { %v906_v2 = vmul.f32 %v1495_v63, %v890_v41 }
 0x50d   : > { %v914_v4 = vmul.f32 %v1340_v0, %v906_v2 }
 0x50e   : > { %v1497_v5 = vpop.eup %1496 }
 0x50f   : > { %v922_v6 = vadd.f32 %v1341_v3, %v914_v4  ;;  %v907_v7 = vmul.f32 %v1497_v5, %v891_v45 }
 0x511   : > { %v953_v8 = vrot.slane %v922_v6, 6  ;;  %v915_v9 = vmul.f32 %v1340_v0, %v907_v7 }
 0x513   : > { %v923_v11 = vadd.f32 %v1341_v3, %v915_v9  ;;  %v959_v12 = vsel %vm466_vm0, 0.0, %v953_v8 }
 0x514   : > { %v996_v14 = vrot.slane %v959_v12, 4  ;;  %v974_v15 = vrot.slane %v959_v12, 2  ;;  %v963_v19 = vrot.slane %v959_v12, 1  ;;  %v985_v20 = vrot.slane %v959_v12, 3 }
 0x515   : > { %v954_v13 = vrot.slane %v923_v11, 6 }
 0x517   : > { %v955_v17 = vsel %vm466_vm0, %v953_v8, %v954_v13  ;;  %v960_v18 = vsel %vm466_vm0, %v954_v13, 0.0 }
 0x518   : > { %v997_v21 = vrot.slane %v955_v17, 4  ;;  %v999_v22 = vrot.slane %v960_v18, 4  ;;  %v975_v23 = vrot.slane %v955_v17, 2  ;;  %v977_v24 = vrot.slane %v960_v18, 2 }
 0x519   : > { %v964_v25 = vrot.slane %v955_v17, 1  ;;  %v966_v26 = vrot.slane %v960_v18, 1  ;;  %v986_v1 = vrot.slane %v955_v17, 3  ;;  %v988_v27 = vrot.slane %v960_v18, 3 }
 0x51a   : > { %v998_v28 = vsel %vm513_vm4, %v996_v14, %v997_v21  ;;  %v1000_v29 = vsel %vm513_vm4, %v997_v21, %v999_v22  ;;  %v976_v30 = vsel %vm489_vm2, %v974_v15, %v975_v23  ;;  %v978_v31 = vsel %vm489_vm2, %v975_v23, %v977_v24  ;;  %v1488_v14 = vld [vmem:[%s1862_s10 + $0x8] sm:$0xff]  }
 0x51b   : > { %v1010_v32 = vpack.c.bf16 %v1000_v29, %v998_v28  ;;  %v1448_v33 = vpack.i.bf16 %v978_v31, %v976_v30  ;;  %v965_v34 = vsel %vm477_vm1, %v963_v19, %v964_v25  ;;  %v967_v35 = vsel %vm477_vm1, %v964_v25, %v966_v26  ;;  %v1377_v25 = vld [vmem:[%s1860_s8 + $0x1] ss:$0 sm:$0xff] }
 0x51c   : > { %v1443_v36 = vpack.i.bf16 %v967_v35, %v965_v34  ;;  %v987_v37 = vsel %vm501_vm3, %v985_v20, %v986_v1  ;;  %v989_v38 = vsel %vm501_vm3, %v986_v1, %v988_v27  ;;  %v1514_v15 = vmov 0.0   ;;  %v1378_v28 = vld [vmem:[%s1861_s9 + $0x1] ss:$0 sm:$0xff] }
 0x51d   : > { %1376 = vmatprep.mubr.msk.bf16.mxu0 %vm521_vm5, %v1010_v32  ;;  %1449 = vrot.lane.b32.xlu0 %v1448_v33, %s1513_s30  ;;  %v1453_v39 = vpack.i.bf16 %v989_v38, %v987_v37  ;;  %v1379_v33 = vld [vmem:[%s1863_s11] ss:$0 sm:$0xff] }
 0x51e   : > { %1444 = vrot.lane.b32.xlu1 %v1443_v36, %s1511_s23  ;;  %1391 = vmatprep.subr.bf16.mxu1 %v1514_v15 }
 0x51f   : > { %1395 = vmatprep.mubr.msk.bf16.mxu1 %vm1515_vm8, %v1514_v15  ;;  %1392 = vmatpush3.bf16.msra.mxu1 %v1488_v14 }
 0x520   : > { %1393 = vmatprep.subr.bf16.mxu1 %v1514_v15 }
 0x522   : > { %1454 = vrot.lane.b32.xlu1 %v1453_v39, %s1512_s26 }
 0x523   : > { %1394 = vmatpush3.bf16.msra.mxu1 %v1489_v16 }
 0x58f   : > { %v1450_v40 = vpop.permute.xlu0 %1449 }
 0x590   : > { %v1445_v41 = vpop.permute.xlu1 %1444  ;;  %v1452_v44 = vunpack.i.h.bf16 %v1450_v40  ;;  %v1451_v45 = vunpack.i.l.bf16 %v1450_v40 }
 0x591   : > { %v1447_v42 = vunpack.i.h.bf16 %v1445_v41  ;;  %v1446_v43 = vunpack.i.l.bf16 %v1445_v41 }
 0x593   : > { %v1004_v46 = vsel %vm521_vm5, %v955_v17, %v1447_v42  ;;  %v1003_v47 = vsel %vm521_vm5, %v959_v12, %v1446_v43 }
 0x594   : > { %v1455_v48 = vpop.permute.xlu1 %1454  ;;  %v1005_v51 = vsel %vm524_vm6, %v1003_v47, %v1451_v45  ;;  %v1006_v52 = vsel %vm524_vm6, %v1004_v46, %v1452_v44 }
 0x595   : > { %v1457_v49 = vunpack.i.h.bf16 %v1455_v48  ;;  %v1456_v50 = vunpack.i.l.bf16 %v1455_v48 }
 0x597   : > { %v1007_v53 = vsel %vm527_vm7, %v1005_v51, %v1456_v50  ;;  %v1008_v54 = vsel %vm527_vm7, %v1006_v52, %v1457_v49 }
 0x598   : > { %v1009_v55 = vpack.c.bf16 %v1008_v54, %v1007_v53 }
 0x59a   : > { %1113 = vmatmul.mubr.bf16.vlgmr.msra.gmra.mxu0 %v1009_v55 }
 0x65a   : > { %v1114_v57 = vpop.f32.mrf.mxu0 }
 0x65b   : > { %v1115_v58 = vadd.f32 %v1365_v56, %v1114_v57 }
 0x65c   : > { %v1116_v59 = vpop.f32.mrf.mxu0 }
 0x65d   : > { %v1121_v60 = vmax.f32 %v1115_v58, 0.0 }
 0x65e   : > { %v1117_v61 = vpop.f32.mrf.mxu0 }
 0x65f   : > { %v1118_v62 = vadd.f32 %v1365_v56, %v1117_v61  ;;  %v1123_v63 = vsel %vm521_vm5, %v1121_v60, 0.0 }
 0x660   : > { %v1119_v0 = vpop.f32.mrf.mxu0  ;;  %1124 = vadd.xlane.f32.xlu1 %v1123_v63 }
 0x661   : > { %v1122_v2 = vmax.f32 %v1118_v62, 0.0 }
 0x663   : > { %v1126_v3 = vsel %vm521_vm5, %v1122_v2, 0.0 }
 0x664   : > { %1127 = vadd.xlane.f32.xlu0 %v1126_v3 }
 0x6e9   : > { %v1125_v4 = vpop.xlane.xlu1 %1124 }
 0x6ea   : > { %v1129_v5 = vmul.f32 0.03125, %v1125_v4 }
 0x6ec   : > { %v1131_v6 = vsub.f32 %v1121_v60, %v1129_v5 }
 0x6ed   : > { %v1128_v7 = vpop.xlane.xlu0 %1127 }
 0x6ee   : > { %v1130_v8 = vmul.f32 0.03125, %v1128_v7  ;;  %v1133_v9 = vmul.f32 %v1131_v6, %v1131_v6 }
 0x6f0   : > { %v1132_v10 = vsub.f32 %v1122_v2, %v1130_v8  ;;  %v1135_v11 = vsel %vm521_vm5, %v1133_v9, 0.0 }
 0x6f1   : > { %1136 = vadd.xlane.f32.xlu0 %v1135_v11 }
 0x6f2   : > { %v1134_v12 = vmul.f32 %v1132_v10, %v1132_v10 }
 0x6f4   : > { %v1138_v13 = vsel %vm521_vm5, %v1134_v12, 0.0 }
 0x6f5   : > { %1139 = vadd.xlane.f32.xlu1 %v1138_v13 }
 0x77a   : > { %v1137_v17 = vpop.xlane.xlu0 %1136 }
 0x77b   : > { %v1141_v18 = vmul.f32 0.03125, %v1137_v17 }
 0x77d   : > { %v1143_v19 = vadd.f32 1e-12, %v1141_v18 }
 0x77e   : > { %v1140_v20 = vpop.xlane.xlu1 %1139 }
 0x77f   : > { %1498 = vrsqrt.f32 %v1143_v19  ;;  %v1142_v21 = vmul.f32 0.03125, %v1140_v20 }
 0x781   : > { %v1144_v22 = vadd.f32 1e-12, %v1142_v21 }
 0x783   : > { %1500 = vrsqrt.f32 %v1144_v22 }
 0x78c   : > { %v1499_v23 = vpop.eup %1498 }
 0x78d   : > { %v1147_v24 = vmul.f32 %v1499_v23, %v1131_v6 }
 0x78f   : > { %v1155_v27 = vmul.f32 %v1377_v25, %v1147_v24 }
 0x790   : > { %v1501_v26 = vpop.eup %1500 }
 0x791   : > { %v1148_v1 = vmul.f32 %v1501_v26, %v1132_v10  ;;  %v1163_v30 = vadd.f32 %v1378_v28, %v1155_v27 }
 0x793   : > { %v1156_v29 = vmul.f32 %v1377_v25, %v1148_v1 }
 0x795   : > { %v1164_v31 = vadd.f32 %v1378_v28, %v1156_v29 }
 0x797   : > { %v1165_v32 = vpack.c.bf16 %v1164_v31, %v1163_v30 }
 0x799   : > { %1396 = vmatmul.mubr.msk.bf16.vlgmr.msra.gmra.mxu1 %vm521_vm5, %v1165_v32 }
 0x859   : > { %v1226_v34 = vpop.f32.mrf.mxu1 }
 0x85a   : > { %v1227_v35 = vadd.f32 %v1379_v33, %v1226_v34 }
 0x85b   : > { %v1397_v36 = vpop.f32.mrf.mxu1 }
 0x85c   : > { %1234 = vst.msk [vmem:[%s433_s17] sm:$0xff] %vm1233_vm9, %v1227_v35 }
 0x85d   : > { %v1229_v37 = vpop.f32.mrf.mxu1 }
 0x85e   : > { %v1230_v38 = vadd.f32 %v1379_v33, %v1229_v37 }
 0x85f   : > { %v1398_v39 = vpop.f32.mrf.mxu1 }
 0x860   : > { %1235 = vst.msk [vmem:[%s433_s17 + $0x8] sm:$0xff] %vm1233_vm9, %v1230_v38 }
 0x861 PF: > { %s22_s21 = sadd.s32 1, %s1508_s21  }
 0x862   : > { %p19_p4 = scmp.ge.s32.totalorder %s22_s21, 4  }
 0x864   :  { %21 = sbr.rel (!%p19_p4) target bundleno = 1 (0x1), region = 105 }

</bundles_post_ra>
